<compile_context>
chip_gen: v6e
topology: v6e:2x2x1
jax: 0.10.0
libtpu: 0.0.40
codegen_flags: <defaults>
</compile_context>

<pallas_src>
import functools

import jax
import jax.numpy as jnp
from jax.experimental import pallas as pl
from jax.experimental.pallas import tpu as pltpu


def _round_up(x, m):
    return ((x + m - 1) // m) * m


def _pad2d(x, rows, cols):
    r, c = x.shape
    return jnp.pad(x, ((0, rows - r), (0, cols - c)))


# ---------------- stage A: m01 = rsqrt(edge_deg)[:, None] * (inc^T @ x0) ----------------
def _stage_a_kernel(incT_ref, x0_ref, escale_ref, m01_ref, acc_ref):
    k = pl.program_id(1)  # node-tile (reduction) index

    @pl.when(k == 0)
    def _():
        acc_ref[...] = jnp.zeros_like(acc_ref)

    acc_ref[...] += jnp.dot(
        incT_ref[...].astype(jnp.float32),           # bf16 (exact 0/1) -> f32
        x0_ref[...],
        preferred_element_type=jnp.float32)

    @pl.when(k == pl.num_programs(1) - 1)
    def _():
        m01_ref[...] = (acc_ref[...] * escale_ref[...]).astype(m01_ref.dtype)


# ---- stage B: out = ((1-a)*rsqrt(node_deg)[:,None] * (inc @ m01) + a*x_skip) @ w_eff ----
def _stage_b_kernel(inc_ref, m01_ref, nscale_ref, xskip_ref, weff_ref,
                    out_ref, acc_ref, *, alpha):
    k = pl.program_id(1)  # edge-tile (reduction) index

    @pl.when(k == 0)
    def _():
        acc_ref[...] = jnp.zeros_like(acc_ref)

    acc_ref[...] += jnp.dot(
        inc_ref[...].astype(jnp.float32),
        m01_ref[...],
        preferred_element_type=jnp.float32)

    @pl.when(k == pl.num_programs(1) - 1)
    def _():
        x_comb = acc_ref[...] * nscale_ref[...] + alpha * xskip_ref[...]
        out_ref[...] = jnp.dot(
            x_comb, weff_ref[...],
            preferred_element_type=jnp.float32).astype(out_ref.dtype)


def unigcnii_forward(x_0, incidence_1, weight, alpha, beta, x_skip=None,
                     *, tile_n=256, tile_e=512):
    """Pallas implementation of UniGCNIILayer.forward.

    x_0:          [num_nodes, in_channels] float32
    incidence_1:  [num_nodes, num_edges]   float32/0-1 (dense; must contain self-loops)
    weight:       [in_channels, in_channels] float32 (PyTorch Linear weight, y = x @ W.T)
    """
    if x_skip is None:
        x_skip = x_0  # reuse the same array; it is only DMA'd once (stage B input)
    n, c = x_0.shape
    _, e = incidence_1.shape
    alpha = float(alpha)
    beta = float(beta)

    # ---- degree reductions hoisted out of the kernel (reusable across layers) ----
    inc_f32 = incidence_1.astype(jnp.float32)
    node_degree = jnp.sum(inc_f32, axis=1)                          # [N]
    edge_degree = jnp.sum(node_degree[:, None] * inc_f32, axis=0)   # [E]
    # NOTE: assumes every edge has >= 1 node and every node a self-loop (module contract).
    edge_degree = edge_degree / jnp.sum(inc_f32, axis=0)
    node_scale = (1.0 - alpha) * jax.lax.rsqrt(node_degree)         # (1-alpha) folded in
    edge_scale = jax.lax.rsqrt(edge_degree)

    # ---- fold beta into the learned weight: out = x_comb @ ((1-beta) I + beta W^T) ----
    w_eff = beta * weight.T.astype(jnp.float32) + \
        (1.0 - beta) * jnp.eye(c, dtype=jnp.float32)

    # ---- tile sizing + lane-dense padding (zero-filled) ----
    c_pad = _round_up(c, 128)
    tn = min(tile_n, _round_up(n, 8))       # multiple of 8 or full dim
    te = min(tile_e, _round_up(e, 128))     # multiple of 128 or full dim
    n_pad = _round_up(n, tn)
    e_pad = _round_up(e, te)

    inc_bf16 = incidence_1.astype(jnp.bfloat16)          # exact for {0,1} incidence
    inc_p = _pad2d(inc_bf16, n_pad, e_pad)               # [N_pad, E_pad]
    incT_p = _pad2d(inc_bf16.T, e_pad, n_pad)            # [E_pad, N_pad] (no in-kernel transpose)
    x0_p = _pad2d(x_0.astype(jnp.float32), n_pad, c_pad)
    xskip_p = _pad2d(x_skip.astype(jnp.float32), n_pad, c_pad)
    # zero-pad the scales (not the degrees) so padded rows stay exactly 0, never NaN
    nscale_p = _pad2d(node_scale[:, None], n_pad, 1)
    escale_p = _pad2d(edge_scale[:, None], e_pad, 1)
    weff_p = _pad2d(w_eff, c_pad, c_pad)

    grid_a = (e_pad // te, n_pad // tn)
    grid_b = (n_pad // tn, e_pad // te)

    # ---- stage A: m01[E_pad, C_pad] ----
    m01 = pl.pallas_call(
        _stage_a_kernel,
        out_shape=jax.ShapeDtypeStruct((e_pad, c_pad), jnp.float32),
        grid=grid_a,
        in_specs=[
            pl.BlockSpec((te, tn), lambda i, k: (i, k)),
            pl.BlockSpec((tn, c_pad), lambda i, k: (k, 0)),
            pl.BlockSpec((te, 1), lambda i, k: (i, 0)),
        ],
        out_specs=pl.BlockSpec((te, c_pad), lambda i, k: (i, 0)),
        scratch_shapes=[pltpu.VMEM((te, c_pad), jnp.float32)],
        compiler_params=pltpu.CompilerParams(
            dimension_semantics=("parallel", "arbitrary")),
        cost_estimate=pl.CostEstimate(
            flops=2 * e_pad * n_pad * c_pad,
            transcendentals=0,
            bytes_accessed=(2 * e_pad * n_pad + 4 * n_pad * c_pad
                            + 4 * e_pad + 4 * e_pad * c_pad)),
    )(incT_p, x0_p, escale_p)

    # ---- stage B: out[N_pad, C_pad] ----
    out_p = pl.pallas_call(
        functools.partial(_stage_b_kernel, alpha=alpha),
        out_shape=jax.ShapeDtypeStruct((n_pad, c_pad), jnp.float32),
        grid=grid_b,
        in_specs=[
            pl.BlockSpec((tn, te), lambda i, k: (i, k)),
            pl.BlockSpec((te, c_pad), lambda i, k: (k, 0)),
            pl.BlockSpec((tn, 1), lambda i, k: (i, 0)),
            pl.BlockSpec((tn, c_pad), lambda i, k: (i, 0)),
            pl.BlockSpec((c_pad, c_pad), lambda i, k: (0, 0)),
        ],
        out_specs=pl.BlockSpec((tn, c_pad), lambda i, k: (i, 0)),
        scratch_shapes=[pltpu.VMEM((tn, c_pad), jnp.float32)],
        compiler_params=pltpu.CompilerParams(
            dimension_semantics=("parallel", "arbitrary")),
        cost_estimate=pl.CostEstimate(
            flops=2 * n_pad * e_pad * c_pad + 2 * n_pad * c_pad * c_pad,
            transcendentals=0,
            bytes_accessed=(2 * n_pad * e_pad + 4 * e_pad * c_pad
                            + 4 * n_pad + 8 * n_pad * c_pad + 4 * c_pad * c_pad)),
    )(inc_p, m01, nscale_p, xskip_p, weff_p)

    return out_p[:n, :c].astype(x_0.dtype)


def _reference_forward(x_0, incidence_1, weight, alpha, beta, x_skip=None):
    """Plain-JAX reference mirroring the PyTorch module exactly."""
    x_skip = x_0 if x_skip is None else x_skip
    m_0_1 = incidence_1.T @ x_0
    node_degree = jnp.sum(incidence_1, axis=1)
    edge_degree = jnp.sum(jnp.diag(node_degree) @ incidence_1, axis=0)
    edge_degree = edge_degree / jnp.sum(incidence_1, axis=0)
    m_1_0 = (1.0 / jnp.sqrt(node_degree))[:, None] * (
        (incidence_1 @ jnp.diag(1.0 / jnp.sqrt(edge_degree))) @ m_0_1
    )
    x_combined = (1.0 - alpha) * m_1_0 + alpha * x_skip
    return (1.0 - beta) * x_combined + beta * (x_combined @ weight.T)


if __name__ == "__main__":
    key = jax.random.PRNGKey(0)
    k_x, k_inc, k_w = jax.random.split(key, 3)

    num_nodes = 16
    num_extra_edges = 8
    in_channels = 32
    alpha = 0.1
    beta = 0.5

    # Node features.
    x_0 = jax.random.normal(k_x, (num_nodes, in_channels), dtype=jnp.float32)

    # Incidence matrix: self-loop edges (identity) + random hyperedges.
    extra = (jax.random.uniform(k_inc, (num_nodes, num_extra_edges)) < 0.4).astype(
        jnp.float32
    )
    extra = extra.at[0, :].set(1.0)  # guarantee every edge has >= 1 node
    incidence_1 = jnp.concatenate(
        [jnp.eye(num_nodes, dtype=jnp.float32), extra], axis=1
    )  # [num_nodes, num_nodes + num_extra_edges]

    # Deterministic Linear(in_channels, in_channels, bias=False) weight.
    bound = 1.0 / jnp.sqrt(jnp.float32(in_channels))
    weight = jax.random.uniform(
        k_w, (in_channels, in_channels), minval=-bound, maxval=bound, dtype=jnp.float32
    )

    out = unigcnii_forward(x_0, incidence_1, weight, alpha, beta)
    out = jax.block_until_ready(out)

    ref = _reference_forward(x_0, incidence_1, weight, alpha, beta)
    assert out.shape == (num_nodes, in_channels)
    assert jnp.allclose(out, ref, atol=1e-3, rtol=1e-3), "Pallas output mismatch"

    print("KERNEL_OK")
</pallas_src>

<mosaic_0001>
module attributes {stable_mosaic.version = 11 : i64} {
  func.func @_stage_a_kernel(%arg0: i32, %arg1: i32, %arg2: memref<128x16xbf16, #tpu.memory_space<vmem>>, %arg3: memref<16x128xf32, #tpu.memory_space<vmem>>, %arg4: memref<128x1xf32, #tpu.memory_space<vmem>>, %arg5: memref<128x128xf32, #tpu.memory_space<vmem>>, %arg6: memref<128x128xf32, #tpu.memory_space<vmem>>) attributes {dimension_semantics = [#tpu.dimension_semantics<parallel>, #tpu.dimension_semantics<arbitrary>], iteration_bounds = array<i64: 1, 1>, scalar_prefetch = 0 : i64, scratch_operands = 1 : i64, tpu.core_type = #tpu.core_type<tc>, window_params = [{transform_indices = @transform_0, window_bounds = array<i64: 128, 16>}, {transform_indices = @transform_1, window_bounds = array<i64: 16, 128>}, {transform_indices = @transform_2, window_bounds = array<i64: 128, 1>}, {transform_indices = @transform_3, window_bounds = array<i64: 128, 128>}]} {
    %c0_i32 = arith.constant 0 : i32
    %0 = arith.cmpi eq, %arg1, %c0_i32 : i32
    %1 = arith.extui %0 : i1 to i32
    %c0_i32_0 = arith.constant 0 : i32
    %2 = arith.cmpi ne, %1, %c0_i32_0 : i32
    scf.if %2 {
      %cst_10 = arith.constant 0.000000e+00 : f32
      %13 = vector.broadcast %cst_10 : f32 to vector<128x128xf32>
      %c0_11 = arith.constant 0 : index
      %c0_12 = arith.constant 0 : index
      %14 = vector.load %arg6[%c0_11, %c0_12] : memref<128x128xf32, #tpu.memory_space<vmem>>, vector<128x128xf32>
      tpu.vector_store %arg6[%c0_11, %c0_12], %13 {strides = array<i32>} : memref<128x128xf32, #tpu.memory_space<vmem>>, vector<128x128xf32>,
    } else {
    }
    %c0 = arith.constant 0 : index
    %c0_1 = arith.constant 0 : index
    %3 = vector.load %arg6[%c0, %c0_1] : memref<128x128xf32, #tpu.memory_space<vmem>>, vector<128x128xf32>
    %c0_2 = arith.constant 0 : index
    %c0_3 = arith.constant 0 : index
    %4 = vector.load %arg2[%c0_2, %c0_3] : memref<128x16xbf16, #tpu.memory_space<vmem>>, vector<128x16xbf16>
    %5 = arith.extf %4 : vector<128x16xbf16> to vector<128x16xf32>
    %c0_4 = arith.constant 0 : index
    %c0_5 = arith.constant 0 : index
    %6 = vector.load %arg3[%c0_4, %c0_5] : memref<16x128xf32, #tpu.memory_space<vmem>>, vector<16x128xf32>
    %cst = arith.constant dense<0.000000e+00> : vector<128x128xf32>
    %7 = tpu.matmul %5, %6, %cst {dimension_numbers = #tpu.dot_dimension_numbers<[1], [0], [0], [1], [0, 0, 1, 1], [], []>} : vector<128x16xf32>, vector<16x128xf32>, vector<128x128xf32> -> vector<128x128xf32>
    %8 = arith.addf %3, %7 : vector<128x128xf32>
    %c0_6 = arith.constant 0 : index
    %c0_7 = arith.constant 0 : index
    %9 = vector.load %arg6[%c0_6, %c0_7] : memref<128x128xf32, #tpu.memory_space<vmem>>, vector<128x128xf32>
    tpu.vector_store %arg6[%c0_6, %c0_7], %8 {strides = array<i32>} : memref<128x128xf32, #tpu.memory_space<vmem>>, vector<128x128xf32>,
    %c0_i32_8 = arith.constant 0 : i32
    %10 = arith.cmpi eq, %arg1, %c0_i32_8 : i32
    %11 = arith.extui %10 : i1 to i32
    %c0_i32_9 = arith.constant 0 : i32
    %12 = arith.cmpi ne, %11, %c0_i32_9 : i32
    scf.if %12 {
      %c0_10 = arith.constant 0 : index
      %c0_11 = arith.constant 0 : index
      %13 = vector.load %arg6[%c0_10, %c0_11] : memref<128x128xf32, #tpu.memory_space<vmem>>, vector<128x128xf32>
      %c0_12 = arith.constant 0 : index
      %c0_13 = arith.constant 0 : index
      %14 = vector.load %arg4[%c0_12, %c0_13] : memref<128x1xf32, #tpu.memory_space<vmem>>, vector<128x1xf32>
      %15 = vector.broadcast %14 : vector<128x1xf32> to vector<128x128xf32>
      %16 = arith.mulf %13, %15 : vector<128x128xf32>
      %c0_14 = arith.constant 0 : index
      %c0_15 = arith.constant 0 : index
      %17 = vector.load %arg5[%c0_14, %c0_15] : memref<128x128xf32, #tpu.memory_space<vmem>>, vector<128x128xf32>
      tpu.vector_store %arg5[%c0_14, %c0_15], %16 {strides = array<i32>} : memref<128x128xf32, #tpu.memory_space<vmem>>, vector<128x128xf32>,
    } else {
    }
    return
  }
  func.func @transform_0(%arg0: i32, %arg1: i32) -> (i32, i32) {
    %c0_i32 = arith.constant 0 : i32
    return %arg0, %arg1 : i32, i32
  }
  func.func @transform_1(%arg0: i32, %arg1: i32) -> (i32, i32) {
    %c0_i32 = arith.constant 0 : i32
    %c0_i32_0 = arith.constant 0 : i32
    return %arg1, %c0_i32 : i32, i32
  }
  func.func @transform_2(%arg0: i32, %arg1: i32) -> (i32, i32) {
    %c0_i32 = arith.constant 0 : i32
    %c0_i32_0 = arith.constant 0 : i32
    return %arg0, %c0_i32 : i32, i32
  }
  func.func @transform_3(%arg0: i32, %arg1: i32) -> (i32, i32) {
    %c0_i32 = arith.constant 0 : i32
    %c0_i32_0 = arith.constant 0 : i32
    return %arg0, %c0_i32 : i32, i32
  }
}

</mosaic_0001>

<bundles_post_ra>
// kernel: tpu_custom_call.1
= control target key start
LH: loop header
LB: loop body
LE: loop exit
PB: predicated region body
PF: predicated region fallthrough
CT: control target
= control target key end

     0   :  { %vm85_vm0 = vcmask 130048   ;;  %v607_v22 = vmov 0   ;;  %s728_s0 = inlined_call_operand.vmem [shape: bf16[128,16], index: 0, kind: input, shape index: {}]   ;;  %s729_s1 = inlined_call_operand.vmem [shape: f32[16,128], index: 1, kind: input, shape index: {}]   ;;  %s730_s2 = inlined_call_operand.vmem [shape: f32[128,1], index: 2, kind: input, shape index: {}]   ;;  %s731_s3 = inlined_call_operand.hbm [shape: f32[128,128], index: 3, kind: output, shape index: {}]  }
   0x1   :  { %v84_v0 = vld [vmem:[%s729_s1 + $0x8] sm:$0xff]  ;;  %v83_v1 = vld [vmem:[%s729_s1] sm:$0xff]  ;;  %v523_v12 = vld [vmem:[%s728_s0 + $0x10] sm:$0xff]   ;;  %584 = vset.pattern.permute.xlu1 %v607_v22  ;;  %583 = vset.pattern.permute.xlu0 %v607_v22 }
   0x2   :  { %v491_v2 = vld [vmem:[%s728_s0] sm:$0xff]   ;;  %547 = vmatprep.subr.mxu0 %v84_v0  ;;  %575 = vmatprep.subr.mxu1 %v84_v0  ;;  %v522_v5 = vld [vmem:[%s728_s0 + $0x8] sm:$0xff]   ;;  %v527_v13 = vld [vmem:[%s728_s0 + $0x30] sm:$0xff]   ;;  %v500_v18 = vunpack.c.l.bf16 %v523_v12 }
   0x3   :  { %v492_v3 = vunpack.c.l.bf16 %v491_v2  ;;  %v525_v4 = vld [vmem:[%s728_s0 + $0x20] sm:$0xff]   ;;  %v526_v6 = vld [vmem:[%s728_s0 + $0x28] sm:$0xff]   ;;  %548 = vmatpush3.msra.mxu0 %v84_v0  ;;  %577 = vmatpush3.msra.mxu1 %v84_v0  ;;  %v493_v7 = vunpack.c.h.bf16 %v491_v2  ;;  %v496_v10 = vunpack.c.l.bf16 %v522_v5  ;;  %v497_v14 = vunpack.c.h.bf16 %v522_v5  ;;  %v332_v16 = vld [vmem:[%s730_s2 + $0x10] sm:$0xff] }
   0x4   :  { %v508_v8 = vunpack.c.l.bf16 %v525_v4  ;;  %v509_v9 = vunpack.c.h.bf16 %v525_v4  ;;  %549 = vmatprep.subr.mxu0 %v83_v1  ;;  %576 = vmatprep.subr.mxu1 %v83_v1  ;;  %v512_v11 = vunpack.c.l.bf16 %v526_v6  ;;  %v513_v15 = vunpack.c.h.bf16 %v526_v6  ;;  %v330_v17 = vld [vmem:[%s730_s2] sm:$0xff]  ;;  %v524_v20 = vld [vmem:[%s728_s0 + $0x18] sm:$0xff]  }
   0x5   :  { %550 = vmatpush3.msra.mxu0 %v83_v1  ;;  %578 = vmatpush3.msra.mxu1 %v83_v1  ;;  %v516_v19 = vunpack.c.l.bf16 %v527_v13  ;;  %v528_v21 = vld [vmem:[%s728_s0 + $0x38] sm:$0xff]  }
   0x6   :  { %551 = vmatprep.mubr.msk.f32.mxu0 %vm85_vm0, %v492_v3  ;;  %563 = vmatprep.mubr.msk.f32.mxu1 %vm85_vm0, %v508_v8 }
   0x7   :  { %552 = vmatmul.mubr.msk.f32.vlgmr.msra.gmra.mxu0 %vm85_vm0, %v493_v7  ;;  %564 = vmatmul.mubr.msk.f32.vlgmr.msra.gmra.mxu1 %vm85_vm0, %v509_v9 }
   0x8   :  { %554 = vmatprep.mubr.msk.f32.mxu0 %vm85_vm0, %v496_v10  ;;  %566 = vmatprep.mubr.msk.f32.mxu1 %vm85_vm0, %v512_v11 }
   0x9   :  { %8 = vsyncpa [#allocation4], 0  ;;  %358 = vperm.xlu1 %584, %v332_v16   ;;  %348 = vperm.xlu0 %583, %v330_v17   ;;  %v501_v23 = vunpack.c.h.bf16 %v523_v12  ;;  %v517_v24 = vunpack.c.h.bf16 %v527_v13  ;;  %v333_v25 = vld [vmem:[%s730_s2 + $0x18] sm:$0xff]  ;;  %v331_v26 = vld [vmem:[%s730_s2 + $0x8] sm:$0xff]  ;;  %v504_v27 = vunpack.c.l.bf16 %v524_v20  ;;  %v520_v28 = vunpack.c.l.bf16 %v528_v21 }
   0xa   :  { %v505_v29 = vunpack.c.h.bf16 %v524_v20  ;;  %v521_v30 = vunpack.c.h.bf16 %v528_v21  ;;  %v335_v31 = vld [vmem:[%s730_s2 + $0x28] sm:$0xff]  ;;  %v334_v32 = vld [vmem:[%s730_s2 + $0x20] sm:$0xff]  ;;  %v337_v33 = vld [vmem:[%s730_s2 + $0x38] sm:$0xff] }
   0xb   :  { %555 = vmatmul.mubr.msk.f32.gmra.mxu0 %vm85_vm0, %v497_v14  ;;  %567 = vmatmul.mubr.msk.f32.gmra.mxu1 %vm85_vm0, %v513_v15  ;;  %v336_v34 = vld [vmem:[%s730_s2 + $0x30] sm:$0xff]  ;;  %v339_v35 = vld [vmem:[%s730_s2 + $0x48] sm:$0xff]  ;;  %v338_v36 = vld [vmem:[%s730_s2 + $0x40] sm:$0xff] }
   0xc   :  { %557 = vmatprep.mubr.msk.f32.mxu0 %vm85_vm0, %v500_v18  ;;  %569 = vmatprep.mubr.msk.f32.mxu1 %vm85_vm0, %v516_v19  ;;  %v341_v37 = vld [vmem:[%s730_s2 + $0x58] sm:$0xff]  ;;  %v340_v38 = vld [vmem:[%s730_s2 + $0x50] sm:$0xff]  ;;  %v343_v39 = vld [vmem:[%s730_s2 + $0x68] sm:$0xff] }
   0xd   :  { %363 = vperm.xlu1 %584, %v333_v25   ;;  %353 = vperm.xlu0 %583, %v331_v26   ;;  %v342_v40 = vld [vmem:[%s730_s2 + $0x60] sm:$0xff]  ;;  %v345_v41 = vld [vmem:[%s730_s2 + $0x78] sm:$0xff]  ;;  %v344_v42 = vld [vmem:[%s730_s2 + $0x70] sm:$0xff]  ;;  %s608_s2 = smov [#allocation3]  }
   0xe   :  { %s463_s7 = sshll.u32 %s608_s2, 4  ;;  %s464_s7 = int_to_ptr.vmem [resolvable:$true] %s463_s7 }
   0xf   :  { %558 = vmatmul.mubr.msk.f32.gmra.mxu0 %vm85_vm0, %v501_v23  ;;  %570 = vmatmul.mubr.msk.f32.gmra.mxu1 %vm85_vm0, %v517_v24  ;;  %s585_s8 = scalar_lea.vmem %s464_s7, 2048  ;;  %p590_p1 = scmp.lt.s32.totalorder %s464_s7, %s464_s7 }
  0x10   :  { %560 = vmatprep.mubr.msk.f32.mxu0 %vm85_vm0, %v504_v27  ;;  %572 = vmatprep.mubr.msk.f32.mxu1 %vm85_vm0, %v520_v28  ;;  %p586_p0 = scmp.ne.s32.totalorder %s464_s7, %s585_s8  ;;  %p591_p2 = scmp.lt.s32.totalorder %s585_s8, %s585_s8 }
  0x11   :  { %373 = vperm.xlu1 %584, %v335_v31   ;;  %368 = vperm.xlu0 %583, %v334_v32  }
  0x12   :  { %p592_p3 = por %p591_p2, %p590_p1 }
  0x13   :  { %561 = vmatmul.mubr.msk.f32.gmra.mxu0 %vm85_vm0, %v505_v29  ;;  %573 = vmatmul.mubr.msk.f32.gmra.mxu1 %vm85_vm0, %v521_v30 }
  0x14   :  { %p593_p4 = pnand %p592_p3, %p586_p0 }
  0x15   :  { %383 = vperm.xlu1 %584, %v337_v33   ;;  %378 = vperm.xlu0 %583, %v336_v34  }
  0x19   :  { %393 = vperm.xlu1 %584, %v339_v35   ;;  %388 = vperm.xlu0 %583, %v338_v36  }
  0x1d   :  { %403 = vperm.xlu1 %584, %v341_v37   ;;  %398 = vperm.xlu0 %583, %v340_v38  }
  0x21   :  { %413 = vperm.xlu1 %584, %v343_v39   ;;  %408 = vperm.xlu0 %583, %v342_v40  }
  0x25   :  { %423 = vperm.xlu1 %584, %v345_v41   ;;  %418 = vperm.xlu0 %583, %v344_v42  }
  0x84   :  { %v359_v43 = vpop.permute.xlu1 %358  ;;  %v349_v44 = vpop.permute.xlu0 %348 }
  0x88   :  { %v364_v45 = vpop.permute.xlu1 %363  ;;  %v354_v46 = vpop.permute.xlu0 %353 }
  0x8c   :  { %v374_v47 = vpop.permute.xlu1 %373  ;;  %v369_v48 = vpop.permute.xlu0 %368 }
  0x90   :  { %v384_v49 = vpop.permute.xlu1 %383  ;;  %v379_v50 = vpop.permute.xlu0 %378 }
  0x94   :  { %v394_v51 = vpop.permute.xlu1 %393  ;;  %v389_v52 = vpop.permute.xlu0 %388 }
  0x98   :  { %v404_v53 = vpop.permute.xlu1 %403  ;;  %v399_v56 = vpop.permute.xlu0 %398 }
  0x9c   :  { %v414_v1 = vpop.permute.xlu1 %413  ;;  %v409_v6 = vpop.permute.xlu0 %408 }
  0xa0   :  { %v424_v15 = vpop.permute.xlu1 %423  ;;  %v419_v20 = vpop.permute.xlu0 %418 }
  0xc7   :  { %v553_v54 = vpop.f32.mrf.mxu0  ;;  %v565_v55 = vpop.f32.mrf.mxu1 }
  0xc8   :  { %v427_v57 = vmul.f32 %v553_v54, %v354_v46  ;;  %v435_v58 = vmul.f32 %v565_v55, %v394_v51 }
  0xc9   :  { %v200_v59 = vpop.f32.mrf.mxu0  ;;  %v240_v60 = vpop.f32.mrf.mxu1 }
  0xca   :  { %443 = vst [vmem:[#allocation3 + $0x8] sm:$0xff] %v427_v57  ;;  %451 = vst [vmem:[#allocation3 + $0x48] sm:$0xff] %v435_v58  ;;  %v426_v61 = vmul.f32 %v349_v44, %v200_v59  ;;  %v434_v62 = vmul.f32 %v389_v52, %v240_v60 }
  0xcb   :  { %v556_v63 = vpop.f32.mrf.mxu0  ;;  %v568_v0 = vpop.f32.mrf.mxu1 }
  0xcc   :  { %442 = vst [vmem:[#allocation3] sm:$0xff] %v426_v61  ;;  %450 = vst [vmem:[#allocation3 + $0x40] sm:$0xff] %v434_v62  ;;  %v429_v2 = vmul.f32 %v556_v63, %v364_v45  ;;  %v437_v3 = vmul.f32 %v568_v0, %v404_v53 }
  0xcd   :  { %v210_v4 = vpop.f32.mrf.mxu0  ;;  %v250_v5 = vpop.f32.mrf.mxu1 }
  0xce   :  { %445 = vst [vmem:[#allocation3 + $0x18] sm:$0xff] %v429_v2  ;;  %453 = vst [vmem:[#allocation3 + $0x58] sm:$0xff] %v437_v3  ;;  %v428_v7 = vmul.f32 %v359_v43, %v210_v4  ;;  %v436_v8 = vmul.f32 %v399_v56, %v250_v5 }
  0xcf   :  { %v559_v9 = vpop.f32.mrf.mxu0  ;;  %v571_v10 = vpop.f32.mrf.mxu1 }
  0xd0   :  { %444 = vst [vmem:[#allocation3 + $0x10] sm:$0xff] %v428_v7  ;;  %452 = vst [vmem:[#allocation3 + $0x50] sm:$0xff] %v436_v8  ;;  %v431_v11 = vmul.f32 %v559_v9, %v374_v47  ;;  %v439_v12 = vmul.f32 %v571_v10, %v414_v1 }
  0xd1   :  { %v220_v13 = vpop.f32.mrf.mxu0  ;;  %v260_v14 = vpop.f32.mrf.mxu1 }
  0xd2   :  { %447 = vst [vmem:[#allocation3 + $0x28] sm:$0xff] %v431_v11  ;;  %455 = vst [vmem:[#allocation3 + $0x68] sm:$0xff] %v439_v12  ;;  %v430_v16 = vmul.f32 %v369_v48, %v220_v13  ;;  %v438_v17 = vmul.f32 %v409_v6, %v260_v14 }
  0xd3   :  { %v562_v18 = vpop.f32.mrf.mxu0  ;;  %v574_v19 = vpop.f32.mrf.mxu1 }
  0xd4   :  { %446 = vst [vmem:[#allocation3 + $0x20] sm:$0xff] %v430_v16  ;;  %454 = vst [vmem:[#allocation3 + $0x60] sm:$0xff] %v438_v17  ;;  %v433_v21 = vmul.f32 %v562_v18, %v384_v49  ;;  %v441_v22 = vmul.f32 %v574_v19, %v424_v15 }
  0xd5   :  { %v230_v23 = vpop.f32.mrf.mxu0  ;;  %v270_v24 = vpop.f32.mrf.mxu1 }
  0xd6   :  { %449 = vst [vmem:[#allocation3 + $0x38] sm:$0xff] %v433_v21  ;;  %457 = vst [vmem:[#allocation3 + $0x78] sm:$0xff] %v441_v22  ;;  %v432_v25 = vmul.f32 %v379_v50, %v230_v23  ;;  %v440_v26 = vmul.f32 %v419_v20, %v270_v24 }
  0xd8   :  { %448 = vst [vmem:[#allocation3 + $0x30] sm:$0xff] %v432_v25  ;;  %456 = vst [vmem:[#allocation3 + $0x70] sm:$0xff] %v440_v26 }
  0xd9   :  { %596 = shalt.err (!%p593_p4)
}
  0xda   :  { %s609_s9 = smov 128   ;;  %s610_s10 = smov 8  }
  0xdb   :  { %469 = dma.vmem_to_hbm [thread:$0]  %s464_s7, 2048, %s731_s3, [#allocation4], %s609_s9, %s609_s9, %s610_s10  }
  0xdc   :  { %605 = dma.done.wait [#allocation4], 2048  }
  0xdd   :  { %606 = vsyncadd [#allocation4], 4294965248 }
  0xde   :  { %473 = vsyncpa [#allocation4], 1 }

</bundles_post_ra>
